<compile_context>
chip_gen: v7x
topology: tpu7x:2x2x1
jax: 0.10.0
libtpu: 0.0.40
codegen_flags: <defaults>
</compile_context>

<pallas_src>
import functools
import math

import jax
import jax.numpy as jnp
from jax.experimental import pallas as pl
from jax.experimental.pallas import tpu as pltpu

LANE = 128


def _self_attention_kernel(qk_ref, v_ref, w_proj_ref, w_out_ref, b_ref,
                           out_ref, lhs_ref, *, dim):
    D = dim

    # --- lane-dense S reduction ---------------------------------------------
    # v_ref is (B, S/fold, fold*D): full (8,128) vregs instead of 32-lane rows.
    vsum = jnp.sum(v_ref[...], axis=1)            # (B, fold*D) f32
    width = v_ref.shape[2]
    shift = width // 2
    # Fold the `fold` lane-blocks of width D down into lanes 0:D.  At each step
    # the operand is (2*shift)-periodic along lanes, so the rotation direction
    # is irrelevant; rolls ride the XLU slot, not the VALU.
    while shift >= D:
        vsum = vsum + pltpu.roll(vsum, shift=shift, axis=1)
        shift //= 2
    v_sum = vsum[:, 0:D]                          # (B, D) = sum_s value[b, s, :]

    # --- fused projection: one (B,3D)x(3D,4D) MXU push ------------------------
    # LHS = [query | key | sum_s(value)] assembled in a VMEM scratch.
    lhs_ref[:, 0:2 * D] = qk_ref[...]
    lhs_ref[:, 2 * D:3 * D] = v_sum
    lhs = lhs_ref[...].astype(w_proj_ref.dtype)   # bf16 operands, f32 accumulate
    b = b_ref[...]
    proj = jnp.dot(lhs, w_proj_ref[...],
                   preferred_element_type=jnp.float32) + b[0:1, :]   # (B, 4D)

    k1 = proj[:, 0:D]               # W_K(key)
    v1m = proj[:, D:2 * D]          # mean_s W_V(value)   (1/S folded into RHS)
    q_mean = proj[:, 2 * D:3 * D]   # scale * mean_j W_Q(query), replicated over D lanes

    # Output projection commutes with the per-row scalar d1:
    #   (v1m * d1) @ Wo + bo == d1 * (v1m @ Wo) + bo
    # so push it to the MXU now and let it overlap the EUP exp / XLU mean below.
    t = jnp.dot(v1m.astype(w_out_ref.dtype), w_out_ref[...],
                preferred_element_type=jnp.float32)                  # (B, 4D)

    # s[b,i] = exp(scale * k1[b,i] * mean_j q1[b,j]);  d1 = mean_i s
    # TODO(synk): F.dropout(p=0.5) defaults to training=True (stochastic mask
    # scaled by 1/(1-p)); modeled as identity (inference), so d1 == mean_i s.
    # NOTE: like the reference math, exp() has no max-subtraction overflow guard.
    s = jnp.exp(k1 * q_mean)
    d1 = jnp.mean(s, axis=1, keepdims=True)                           # (B, 1)

    # Lane-dense (B, 4D) unmasked store; the wrapper slices columns 0:D.
    out_ref[...] = (d1 * t + b[1:2, :]).astype(out_ref.dtype)


def pack_params(wq, bq, wk, bk, wv, bv, wo, bo, *, seq_len, scale,
                matmul_dtype=jnp.bfloat16):
    """Fold the 4 Linear layers (weights stored as (in, out)) into the kernel's
    fused operands.

      w_proj (3D,4D): rows 0:D    (x query)       -> cols 2D:3D = scale*mean_j Wq (replicated)
                      rows D:2D   (x key)         -> cols 0:D   = Wk
                      rows 2D:3D  (x sum_s value) -> cols D:2D  = Wv / seq_len
      w_out  (D,4D):  cols 0:D = Wo (rest zero, keeps the output store lane-dense)
      b_pack (2,4D):  row 0 = fused-projection bias, row 1 = output bias
    """
    D = wq.shape[0]
    wq_col = jnp.mean(wq, axis=1) * scale        # only mean_j q1 is ever used
    bq_mean = jnp.mean(bq) * scale

    w_proj = jnp.zeros((3 * D, 4 * D), jnp.float32)
    w_proj = w_proj.at[0:D, 2 * D:3 * D].set(
        jnp.broadcast_to(wq_col[:, None], (D, D)))
    w_proj = w_proj.at[D:2 * D, 0:D].set(wk)
    w_proj = w_proj.at[2 * D:3 * D, D:2 * D].set(wv / seq_len)

    w_out = jnp.zeros((D, 4 * D), jnp.float32).at[:, 0:D].set(wo)

    b_pack = jnp.zeros((2, 4 * D), jnp.float32)
    b_pack = b_pack.at[0, 0:D].set(bk.reshape(-1))
    b_pack = b_pack.at[0, D:2 * D].set(bv.reshape(-1))
    b_pack = b_pack.at[0, 2 * D:3 * D].set(bq_mean)
    b_pack = b_pack.at[1, 0:D].set(bo.reshape(-1))
    return w_proj.astype(matmul_dtype), w_out.astype(matmul_dtype), b_pack


def self_attention(query, key, value, w_proj, w_out, b_pack):
    B, D = query.shape
    S = value.shape[1]

    # Lane-dense layout for the S reduction: (B, S, D) -> (B, S/fold, fold*D)
    # is a free row-major reshape (fold*D == 128 for D = 32).
    fold = LANE // D if (D <= LANE and LANE % D == 0 and S % (LANE // D) == 0) else 1
    v_r = value.reshape(B, S // fold, fold * D)
    qk = jnp.concatenate([query, key], axis=1)    # free XLA concat, (B, 2D)

    kernel = functools.partial(_self_attention_kernel, dim=D)
    vmem = pl.BlockSpec(memory_space=pltpu.MemorySpace.VMEM)
    # Single tiny block (~150 KiB resident): gridless call, everything in VMEM.
    # TODO(synk): if this module is replicated per layer / microbatch, batch the
    # instances over a leading "parallel" grid axis (weights pinned with a
    # constant index_map) to amortize launch cost and use v7x's 2nd TensorCore.
    out_full = pl.pallas_call(
        kernel,
        out_shape=jax.ShapeDtypeStruct((B, 4 * D), jnp.float32),
        in_specs=[vmem] * 5,
        out_specs=vmem,
        scratch_shapes=[pltpu.VMEM((B, 3 * D), jnp.float32)],
    )(qk, v_r, w_proj, w_out, b_pack)
    return out_full[:, :D]


def _reference(query, key, value, wq, bq, wk, bk, wv, bv, wo, bo, scale):
    """Pure-JAX transcription of the original (un-hoisted) PyTorch math."""
    q1 = query @ wq + bq
    k1 = key @ wk + bk
    v1 = jnp.einsum('bsd,de->bse', value, wv) + bv
    q2 = q1[:, None, :]
    k2 = k1[:, :, None]
    q3 = q2 * k2
    s = jnp.mean(q3, axis=2) * scale
    s = jnp.exp(s)
    s = jnp.mean(s, axis=1)
    d2 = 1.0 - s
    d1 = 1.0 - d2                       # dropout modeled as identity
    m = v1 * d1[:, None, None]
    o = jnp.mean(m, axis=1)
    return o @ wo + bo


if __name__ == "__main__":
    # Module feature dims: Linear(32, 32); value is (B, S, D) = (8, 64, 32);
    # query/key use the consistent 2-D (B, D) interpretation.
    B, S, D = 8, 64, 32
    KEY_LEN_INIT = 1
    SCALE = 1.0 / KEY_LEN_INIT          # scale_factor fixed at __init__ time

    root = jax.random.PRNGKey(0)
    keys = jax.random.split(root, 12)
    bound = 1.0 / math.sqrt(D)          # torch nn.Linear default init range

    def init_w(k):                      # stored pre-transposed as (in, out)
        return jax.random.uniform(k, (D, D), jnp.float32, -bound, bound)

    def init_b(k):
        return jax.random.uniform(k, (1, D), jnp.float32, -bound, bound)

    wq, bq = init_w(keys[0]), init_b(keys[1])
    wk, bk = init_w(keys[2]), init_b(keys[3])
    wv, bv = init_w(keys[4]), init_b(keys[5])
    wo, bo = init_w(keys[6]), init_b(keys[7])

    query = jax.random.normal(keys[8], (B, D), jnp.float32)
    key_in = jax.random.normal(keys[9], (B, D), jnp.float32)
    value = jax.random.normal(keys[10], (B, S, D), jnp.float32)

    w_proj, w_out, b_pack = pack_params(wq, bq, wk, bk, wv, bv, wo, bo,
                                        seq_len=S, scale=SCALE)

    out = self_attention(query, key_in, value, w_proj, w_out, b_pack)
    jax.block_until_ready(out)
    assert out.shape == (B, D)

    ref = _reference(query, key_in, value, wq, bq, wk, bk, wv, bv, wo, bo, SCALE)
    err = float(jnp.max(jnp.abs(out - ref)))
    # bf16 matmul operands with f32 accumulation: allow a slightly looser bound.
    assert err < 2e-2, f"kernel vs reference mismatch: max abs err = {err}"

    print("KERNEL_OK")
</pallas_src>

<mosaic_0001>
module attributes {stable_mosaic.version = 11 : i64} {
  func.func @_self_attention_kernel(%arg0: memref<8x64xf32, #tpu.memory_space<vmem>>, %arg1: memref<8x16x128xf32, #tpu.memory_space<vmem>>, %arg2: memref<96x128xbf16, #tpu.memory_space<vmem>>, %arg3: memref<32x128xbf16, #tpu.memory_space<vmem>>, %arg4: memref<2x128xf32, #tpu.memory_space<vmem>>, %arg5: memref<8x128xf32, #tpu.memory_space<vmem>>, %arg6: memref<8x96xf32, #tpu.memory_space<vmem>>) attributes {dimension_semantics = [], scalar_prefetch = 0 : i64, scratch_operands = 1 : i64, tpu.core_type = #tpu.core_type<tc>} {
    %c0 = arith.constant 0 : index
    %c0_0 = arith.constant 0 : index
    %c0_1 = arith.constant 0 : index
    %0 = vector.load %arg1[%c0, %c0_0, %c0_1] : memref<8x16x128xf32, #tpu.memory_space<vmem>>, vector<8x16x128xf32>
    %cst = arith.constant dense<0.000000e+00> : vector<8x128xf32>
    %1 = vector.multi_reduction <add>, %0, %cst [1] : vector<8x16x128xf32> to vector<8x128xf32>
    %c64_i32 = arith.constant 64 : i32
    %2 = tpu.dynamic_rotate %1 by %c64_i32 dim 1 : vector<8x128xf32>, i32 -> vector<8x128xf32>
    %3 = arith.addf %1, %2 : vector<8x128xf32>
    %c32_i32 = arith.constant 32 : i32
    %4 = tpu.dynamic_rotate %3 by %c32_i32 dim 1 : vector<8x128xf32>, i32 -> vector<8x128xf32>
    %5 = arith.addf %3, %4 : vector<8x128xf32>
    %6 = vector.extract_strided_slice %5 {offsets = [0, 0], sizes = [8, 32], strides = [1, 1]} : vector<8x128xf32> to vector<8x32xf32>
    %c0_2 = arith.constant 0 : index
    %c0_3 = arith.constant 0 : index
    %7 = vector.load %arg0[%c0_2, %c0_3] : memref<8x64xf32, #tpu.memory_space<vmem>>, vector<8x64xf32>
    %c0_4 = arith.constant 0 : index
    %c0_5 = arith.constant 0 : index
    %8 = vector.load %arg6[%c0_4, %c0_5] : memref<8x96xf32, #tpu.memory_space<vmem>>, vector<8x64xf32>
    tpu.vector_store %arg6[%c0_4, %c0_5], %7 {strides = array<i32>} : memref<8x96xf32, #tpu.memory_space<vmem>>, vector<8x64xf32>,
    %c0_6 = arith.constant 0 : index
    %c64 = arith.constant 64 : index
    %9 = vector.load %arg6[%c0_6, %c64] : memref<8x96xf32, #tpu.memory_space<vmem>>, vector<8x32xf32>
    tpu.vector_store %arg6[%c0_6, %c64], %6 {strides = array<i32>} : memref<8x96xf32, #tpu.memory_space<vmem>>, vector<8x32xf32>,
    %c0_7 = arith.constant 0 : index
    %c0_8 = arith.constant 0 : index
    %10 = vector.load %arg6[%c0_7, %c0_8] : memref<8x96xf32, #tpu.memory_space<vmem>>, vector<8x96xf32>
    %11 = arith.truncf %10 : vector<8x96xf32> to vector<8x96xbf16>
    %c0_9 = arith.constant 0 : index
    %c0_10 = arith.constant 0 : index
    %12 = vector.load %arg4[%c0_9, %c0_10] : memref<2x128xf32, #tpu.memory_space<vmem>>, vector<2x128xf32>
    %c0_11 = arith.constant 0 : index
    %c0_12 = arith.constant 0 : index
    %13 = vector.load %arg2[%c0_11, %c0_12] : memref<96x128xbf16, #tpu.memory_space<vmem>>, vector<96x128xbf16>
    %cst_13 = arith.constant dense<0.000000e+00> : vector<8x128xf32>
    %14 = tpu.matmul %11, %13, %cst_13 {dimension_numbers = #tpu.dot_dimension_numbers<[1], [0], [0], [1], [0, 0, 1, 1], [], []>} : vector<8x96xbf16>, vector<96x128xbf16>, vector<8x128xf32> -> vector<8x128xf32>
    %15 = vector.extract_strided_slice %12 {offsets = [0, 0], sizes = [1, 128], strides = [1, 1]} : vector<2x128xf32> to vector<1x128xf32>
    %16 = vector.broadcast %15 : vector<1x128xf32> to vector<8x128xf32>
    %17 = arith.addf %14, %16 : vector<8x128xf32>
    %18 = vector.extract_strided_slice %17 {offsets = [0, 0], sizes = [8, 32], strides = [1, 1]} : vector<8x128xf32> to vector<8x32xf32>
    %19 = vector.extract_strided_slice %17 {offsets = [0, 32], sizes = [8, 32], strides = [1, 1]} : vector<8x128xf32> to vector<8x32xf32>
    %20 = vector.extract_strided_slice %17 {offsets = [0, 64], sizes = [8, 32], strides = [1, 1]} : vector<8x128xf32> to vector<8x32xf32>
    %21 = arith.truncf %19 : vector<8x32xf32> to vector<8x32xbf16>
    %c0_14 = arith.constant 0 : index
    %c0_15 = arith.constant 0 : index
    %22 = vector.load %arg3[%c0_14, %c0_15] : memref<32x128xbf16, #tpu.memory_space<vmem>>, vector<32x128xbf16>
    %cst_16 = arith.constant dense<0.000000e+00> : vector<8x128xf32>
    %23 = tpu.matmul %21, %22, %cst_16 {dimension_numbers = #tpu.dot_dimension_numbers<[1], [0], [0], [1], [0, 0, 1, 1], [], []>} : vector<8x32xbf16>, vector<32x128xbf16>, vector<8x128xf32> -> vector<8x128xf32>
    %24 = arith.mulf %18, %20 : vector<8x32xf32>
    %25 = math.exp %24 : vector<8x32xf32>
    %cst_17 = arith.constant dense<0.000000e+00> : vector<8xf32>
    %26 = vector.multi_reduction <add>, %25, %cst_17 [1] : vector<8x32xf32> to vector<8xf32>
    %27 = vector.shape_cast %26 : vector<8xf32> to vector<8x1xf32>
    %cst_18 = arith.constant 3.200000e+01 : f32
    %28 = vector.broadcast %cst_18 : f32 to vector<8x1xf32>
    %29 = arith.divf %27, %28 : vector<8x1xf32>
    %30 = vector.broadcast %29 : vector<8x1xf32> to vector<8x128xf32>
    %31 = arith.mulf %30, %23 : vector<8x128xf32>
    %32 = vector.extract_strided_slice %12 {offsets = [1, 0], sizes = [1, 128], strides = [1, 1]} : vector<2x128xf32> to vector<1x128xf32>
    %33 = vector.broadcast %32 : vector<1x128xf32> to vector<8x128xf32>
    %34 = arith.addf %31, %33 : vector<8x128xf32>
    %c0_19 = arith.constant 0 : index
    %c0_20 = arith.constant 0 : index
    %35 = vector.load %arg5[%c0_19, %c0_20] : memref<8x128xf32, #tpu.memory_space<vmem>>, vector<8x128xf32>
    tpu.vector_store %arg5[%c0_19, %c0_20], %34 {strides = array<i32>} : memref<8x128xf32, #tpu.memory_space<vmem>>, vector<8x128xf32>,
    return
  }
}

</mosaic_0001>

<bundles_post_ra>
// kernel: tpu_custom_call.1
= control target key start
LH: loop header
LB: loop body
LE: loop exit
PB: predicated region body
PF: predicated region fallthrough
CT: control target
= control target key end

     0   :  { %10 = vsyncpa [#allocation4], 0  ;;  %s803_s0 = inlined_call_operand.hbm [shape: f32[8,64], index: 0, kind: input, shape index: {}]   ;;  %s804_s1 = inlined_call_operand.hbm [shape: f32[8,16,128], index: 1, kind: input, shape index: {}]   ;;  %s805_s2 = inlined_call_operand.hbm [shape: bf16[96,128], index: 2, kind: input, shape index: {}]   ;;  %s806_s3 = inlined_call_operand.hbm [shape: bf16[32,128], index: 3, kind: input, shape index: {}]   ;;  %s807_s4 = inlined_call_operand.vmem [shape: f32[2,128], index: 4, kind: input, shape index: {}]   ;;  %s808_s5 = inlined_call_operand.hbm [shape: f32[8,128], index: 5, kind: output, shape index: {}]  }
   0x1   :  { %11 = vsyncpa [#allocation7], 0 }
   0x2   :  { %12 = vsyncpa [#allocation10], 0 }
   0x3   :  { %13 = vsyncpa [#allocation5], 0  ;;  %s659_s18 = smov [#allocation6]   ;;  %s541_s22 = scalar_lea.hbm %s804_s1, 2048 }
   0x4   :  { %s29_s19 = sshll.u32 %s659_s18, 4  ;;  %p542_p0 = scmp.ne.s32.totalorder %s804_s1, %s541_s22  ;;  %s30_s19 = int_to_ptr.vmem [resolvable:$true] %s29_s19 }
   0x5   :  { %p545_p1 = scmp.lt.u32.totalorder %s541_s22, %s804_s1 }
   0x7   :  { %p547_p2 = pnand %p545_p1, %p542_p0 }
   0x9   :  { %550 = shalt.err (!%p547_p2)
}
   0xa   :  { %s551_s27 = scalar_lea.vmem %s30_s19, 2048  ;;  %p556_p4 = scmp.lt.s32.totalorder %s30_s19, %s30_s19 }
   0xb   :  { %p552_p3 = scmp.ne.s32.totalorder %s30_s19, %s551_s27  ;;  %p557_p5 = scmp.lt.s32.totalorder %s551_s27, %s551_s27 }
   0xd   :  { %p558_p6 = por %p557_p5, %p556_p4 }
   0xf   :  { %p559_p7 = pnand %p558_p6, %p552_p3 }
  0x11   :  { %562 = shalt.err (!%p559_p7)
}
  0x12   :  { %s660_s28 = smov 128   ;;  %s661_s29 = smov 8  }
  0x13   :  { %35 = dma.hbm_to_vmem [thread:$0]  %s804_s1, 2048, %s30_s19, [#allocation7], %s660_s28, %s660_s28, %s661_s29  }
  0x14   :  { %s662_s7 = smov [#allocation3]   ;;  %s663_s9 = smov [#allocation8]  }
  0x15   :  { %s20_s8 = sshll.u32 %s662_s7, 4  ;;  %s41_s10 = sshll.u32 %s663_s9, 4  ;;  %s21_s8 = int_to_ptr.vmem [resolvable:$true] %s20_s8  ;;  %s42_s10 = int_to_ptr.vmem [resolvable:$true] %s41_s10 }
  0x16   :  { %s563_s13 = scalar_lea.hbm %s803_s0, 128 }
  0x17   :  { %p564_p8 = scmp.ne.s32.totalorder %s803_s0, %s563_s13  ;;  %p567_p9 = scmp.lt.u32.totalorder %s563_s13, %s803_s0 }
  0x19   :  { %p569_p10 = pnand %p567_p9, %p564_p8 }
  0x1b   :  { %572 = shalt.err (!%p569_p10)
}
  0x1c   :  { %s573_s1 = scalar_lea.vmem %s21_s8, 128  ;;  %p578_p12 = scmp.lt.s32.totalorder %s21_s8, %s21_s8 }
  0x1d   :  { %p574_p11 = scmp.ne.s32.totalorder %s21_s8, %s573_s1  ;;  %p579_p13 = scmp.lt.s32.totalorder %s573_s1, %s573_s1 }
  0x1f   :  { %p580_p0 = por %p579_p13, %p578_p12 }
  0x21   :  { %p581_p1 = pnand %p580_p0, %p574_p11 }
  0x23   :  { %584 = shalt.err (!%p581_p1)
}
  0x24   :  { %23 = dma.hbm_to_vmem [thread:$0]  %s803_s0, 128, %s21_s8, [#allocation4]  }
  0x25   :  { %s585_s22 = scalar_lea.hbm %s805_s2, 768 }
  0x26   :  { %p586_p2 = scmp.ne.s32.totalorder %s805_s2, %s585_s22  ;;  %p589_p3 = scmp.lt.u32.totalorder %s585_s22, %s805_s2 }
  0x28   :  { %p591_p4 = pnand %p589_p3, %p586_p2 }
  0x2a   :  { %594 = shalt.err (!%p591_p4)
}
  0x2b   :  { %s595_s27 = scalar_lea.vmem %s42_s10, 768  ;;  %p600_p6 = scmp.lt.s32.totalorder %s42_s10, %s42_s10 }
  0x2c   :  { %p596_p5 = scmp.ne.s32.totalorder %s42_s10, %s595_s27  ;;  %p601_p7 = scmp.lt.s32.totalorder %s595_s27, %s595_s27 }
  0x2e   :  { %p602_p8 = por %p601_p7, %p600_p6 }
  0x30   :  { %p603_p9 = pnand %p602_p8, %p596_p5 }
  0x32   :  { %606 = shalt.err (!%p603_p9)
}
  0x33   :  { %s664_s0 = smov 64   ;;  %s665_s28 = smov 4  }
  0x34   :  { %47 = dma.hbm_to_vmem [thread:$0]  %s805_s2, 768, %s42_s10, [#allocation7], %s664_s0, %s664_s0, %s665_s28  }
  0x35   :  { %s666_s6 = smov [#allocation9]   ;;  %s607_s11 = scalar_lea.hbm %s806_s3, 256 }
  0x36   :  { %s53_s7 = sshll.u32 %s666_s6, 4  ;;  %p608_p10 = scmp.ne.s32.totalorder %s806_s3, %s607_s11  ;;  %s54_s7 = int_to_ptr.vmem [resolvable:$true] %s53_s7 }
  0x37   :  { %p611_p11 = scmp.lt.u32.totalorder %s607_s11, %s806_s3 }
  0x39   :  { %p613_p12 = pnand %p611_p11, %p608_p10 }
  0x3b   :  { %616 = shalt.err (!%p613_p12)
}
  0x3c   :  { %s617_s16 = scalar_lea.vmem %s54_s7, 256  ;;  %p622_p0 = scmp.lt.s32.totalorder %s54_s7, %s54_s7 }
  0x3d   :  { %p618_p13 = scmp.ne.s32.totalorder %s54_s7, %s617_s16  ;;  %p623_p1 = scmp.lt.s32.totalorder %s617_s16, %s617_s16 }
  0x3f   :  { %p624_p2 = por %p623_p1, %p622_p0 }
  0x41   :  { %p625_p3 = pnand %p624_p2, %p618_p13 }
  0x43   :  { %628 = shalt.err (!%p625_p3)
}
  0x44   :  { %59 = dma.hbm_to_vmem [thread:$0]  %s806_s3, 256, %s54_s7, [#allocation10], %s664_s0, %s664_s0, %s665_s28  }
  0x45   :  { %651 = dma.done.wait [#allocation4], 128  }
  0x46   :  { %652 = vsyncadd [#allocation4], 4294967168 }
  0x47   :  { %653 = dma.done.wait [#allocation7], 2816  }
  0x48   :  { %654 = vsyncadd [#allocation7], 4294964480 }
  0x49   :  { %655 = dma.done.wait [#allocation10], 256  }
  0x4a   :  { %656 = vsyncadd [#allocation10], 4294967040  ;;  %v75_v0 = vld [vmem:[#allocation6] sm:$0xff]  ;;  %v76_v1 = vld [vmem:[#allocation6 + $0x8] sm:$0xff]  ;;  %vm155_vm0 = vcmask 1041409   ;;  %vm157_vm1 = vcmask 1042434  }
  0x4b   :  { %v77_v2 = vld [vmem:[#allocation6 + $0x10] sm:$0xff]  ;;  %v78_v3 = vld [vmem:[#allocation6 + $0x18] sm:$0xff]  ;;  %v79_v4 = vld [vmem:[#allocation6 + $0x20] sm:$0xff]  ;;  %v91_v6 = vadd.f32 %v76_v1, %v75_v0  ;;  %vm159_vm2 = vcmask 1043459   ;;  %vm161_vm3 = vcmask 1044484   ;;  %vm163_vm4 = vcmask 1045509  }
  0x4c   :  { %v80_v5 = vld [vmem:[#allocation6 + $0x28] sm:$0xff]  ;;  %v81_v7 = vld [vmem:[#allocation6 + $0x30] sm:$0xff]  ;;  %v82_v8 = vld [vmem:[#allocation6 + $0x38] sm:$0xff]  ;;  %v98_v10 = vadd.f32 %v78_v3, %v77_v2  ;;  %vm165_vm5 = vcmask 1046534   ;;  %vm167_vm6 = vcmask 1047559   ;;  %s667_s3 = smov 32  }
  0x4d   :  { %v83_v9 = vld [vmem:[#allocation6 + $0x40] sm:$0xff]  ;;  %v105_v11 = vadd.f32 %v80_v5, %v79_v4  ;;  %v84_v12 = vld [vmem:[#allocation6 + $0x48] sm:$0xff]  ;;  %v85_v13 = vld [vmem:[#allocation6 + $0x50] sm:$0xff]  ;;  %v92_v15 = vrot.slane %v91_v6, 4  ;;  %v112_v16 = vadd.f32 %v82_v8, %v81_v7  ;;  %vm246_vm7 = vcmask 523264   ;;  %s670_s18 = smov 96  }
  0x4e   :  { %v86_v14 = vld [vmem:[#allocation6 + $0x58] sm:$0xff]  ;;  %v87_v17 = vld [vmem:[#allocation6 + $0x60] sm:$0xff]  ;;  %v88_v18 = vld [vmem:[#allocation6 + $0x68] sm:$0xff]  ;;  %v99_v20 = vrot.slane %v98_v10, 4  ;;  %v119_v22 = vadd.f32 %v84_v12, %v83_v9  ;;  %vm669_vm8 = vmmov 0   ;;  %vm273_vm9 = vcmask 785920  }
  0x4f   :  { %v89_v19 = vld [vmem:[#allocation6 + $0x70] sm:$0xff]  ;;  %v106_v21 = vrot.slane %v105_v11, 4  ;;  %v126_v23 = vadd.f32 %v86_v14, %v85_v13  ;;  %v90_v24 = vld [vmem:[#allocation6 + $0x78] sm:$0xff]  ;;  %v93_v25 = vadd.f32 %v92_v15, %v91_v6  ;;  %v113_v26 = vrot.slane %v112_v16, 4 }
  0x50   :  { %v133_v27 = vadd.f32 %v88_v18, %v87_v17  ;;  %v100_v28 = vadd.f32 %v99_v20, %v98_v10  ;;  %v120_v30 = vrot.slane %v119_v22, 4  ;;  %v140_v35 = vadd.f32 %v90_v24, %v89_v19 }
  0x51   :  { %v107_v29 = vadd.f32 %v106_v21, %v105_v11  ;;  %v127_v31 = vrot.slane %v126_v23, 4  ;;  %v94_v32 = vrot.slane %v93_v25, 2  ;;  %v114_v33 = vadd.f32 %v113_v26, %v112_v16 }
  0x52   :  { %v134_v34 = vrot.slane %v133_v27, 4  ;;  %v101_v36 = vrot.slane %v100_v28, 2  ;;  %v121_v38 = vadd.f32 %v120_v30, %v119_v22  ;;  %v141_v43 = vrot.slane %v140_v35, 4 }
  0x53   :  { %v108_v37 = vrot.slane %v107_v29, 2  ;;  %v128_v39 = vadd.f32 %v127_v31, %v126_v23  ;;  %v95_v40 = vadd.f32 %v94_v32, %v93_v25  ;;  %v115_v41 = vrot.slane %v114_v33, 2 }
  0x54   :  { %v135_v42 = vadd.f32 %v134_v34, %v133_v27  ;;  %v102_v44 = vadd.f32 %v101_v36, %v100_v28  ;;  %v122_v46 = vrot.slane %v121_v38, 2  ;;  %v142_v51 = vadd.f32 %v141_v43, %v140_v35 }
  0x55   :  { %v109_v45 = vadd.f32 %v108_v37, %v107_v29  ;;  %v129_v47 = vrot.slane %v128_v39, 2  ;;  %v96_v48 = vrot.slane %v95_v40, 1  ;;  %v116_v49 = vadd.f32 %v115_v41, %v114_v33 }
  0x56   :  { %v136_v50 = vrot.slane %v135_v42, 2  ;;  %v103_v52 = vrot.slane %v102_v44, 1  ;;  %v123_v54 = vadd.f32 %v122_v46, %v121_v38  ;;  %v143_v59 = vrot.slane %v142_v51, 2 }
  0x57   :  { %v110_v53 = vrot.slane %v109_v45, 1  ;;  %v130_v55 = vadd.f32 %v129_v47, %v128_v39  ;;  %v97_v56 = vadd.f32 %v96_v48, %v95_v40  ;;  %v117_v57 = vrot.slane %v116_v49, 1  ;;  %v245_v47 = vld [vmem:[#allocation3] sm:$0xff]  ;;  %v532_v48 = vld [vmem:[#allocation8 + $0x8] sm:$0xff]  }
  0x58   :  { %v137_v58 = vadd.f32 %v136_v50, %v135_v42  ;;  %v104_v60 = vadd.f32 %v103_v52, %v102_v44  ;;  %v124_v62 = vrot.slane %v123_v54, 1  ;;  %v144_v2 = vadd.f32 %v143_v59, %v142_v51  ;;  %247 = vst.msk [vmem:[#allocation2] sm:$0xff] %vm246_vm7, %v245_v47  ;;  %v534_v50 = vld [vmem:[#allocation8 + $0x18] sm:$0xff]  }
  0x59   :  { %v111_v61 = vadd.f32 %v110_v53, %v109_v45  ;;  %v131_v63 = vrot.slane %v130_v55, 1  ;;  %v118_v0 = vadd.f32 %v117_v57, %v116_v49  ;;  %v531_v45 = vld [vmem:[#allocation8] sm:$0xff]   ;;  %v668_v46 = vmov 0.0   ;;  %v533_v49 = vld [vmem:[#allocation8 + $0x10] sm:$0xff]  }
  0x5a   :  { %v138_v1 = vrot.slane %v137_v58, 1  ;;  %v125_v3 = vadd.f32 %v124_v62, %v123_v54  ;;  %v156_v5 = vsel %vm155_vm0, %v104_v60, %v97_v56  ;;  %v145_v7 = vrot.slane %v144_v2, 1  ;;  %494 = vmatprep.subr.bf16.mxu0 %v668_v46  ;;  %510 = vmatprep.subr.bf16.mxu1 %v668_v46 }
  0x5b   :  { %v132_v4 = vadd.f32 %v131_v63, %v130_v55  ;;  %v158_v8 = vsel %vm157_vm1, %v111_v61, %v156_v5  ;;  %495 = vmatpush3.bf16.msra.mxu0 %v531_v45  ;;  %v536_v63 = vld [vmem:[#allocation8 + $0x28] sm:$0xff]   ;;  %506 = vmatprep.mubr.msk.bf16.mxu0 %vm669_vm8, %v668_v46  ;;  %vm330_vm10 = vcmask 785408   ;;  %vm394_vm11 = vcmask 261120  }
  0x5c   :  { %v139_v6 = vadd.f32 %v138_v1, %v137_v58  ;;  %v160_v9 = vsel %vm159_vm2, %v118_v0, %v158_v8  ;;  %v146_v10 = vadd.f32 %v145_v7, %v144_v2  ;;  %496 = vmatprep.subr.bf16.mxu0 %v668_v46  ;;  %514 = vmatprep.mubr.msk.bf16.mxu1 %vm669_vm8, %v668_v46 }
  0x5d   :  { %v162_v11 = vsel %vm161_vm3, %v125_v3, %v160_v9 }
  0x5e   :  { %v164_v12 = vsel %vm163_vm4, %v132_v4, %v162_v11 }
  0x5f   :  { %v166_v13 = vsel %vm165_vm5, %v139_v6, %v164_v12  ;;  %497 = vmatpush3.bf16.msra.mxu0 %v532_v48 }
  0x60   :  { %v168_v14 = vsel %vm167_vm6, %v146_v10, %v166_v13  ;;  %498 = vmatprep.subr.bf16.mxu0 %v668_v46 }
  0x61   :  { %170 = vrot.lane.b32.xlu0 %v168_v14, %s664_s0 }
  0x63   :  { %499 = vmatpush3.bf16.msra.mxu0 %v533_v49 }
  0x64   :  { %500 = vmatprep.subr.bf16.mxu0 %v668_v46 }
  0x67   :  { %501 = vmatpush3.bf16.msra.mxu0 %v534_v50 }
  0x68   :  { %502 = vmatprep.subr.bf16.mxu0 %v668_v46 }
  0xd3   :  { %v171_v15 = vpop.permute.xlu0 %170 }
  0xd4   :  { %v173_v16 = vrot.slane %v171_v15, 1  ;;  %v174_v17 = vrot.slane %v171_v15, 2  ;;  %v175_v18 = vrot.slane %v171_v15, 3  ;;  %v176_v19 = vrot.slane %v171_v15, 4 }
  0xd5   :  { %v177_v20 = vrot.slane %v171_v15, 5  ;;  %v178_v21 = vrot.slane %v171_v15, 6  ;;  %v179_v22 = vrot.slane %v171_v15, 7  ;;  %v188_v27 = vadd.f32 %v171_v15, %v97_v56  ;;  %v535_v56 = vld [vmem:[#allocation8 + $0x20] sm:$0xff]  }
  0xd6   :  { %v189_v23 = vadd.f32 %v173_v16, %v104_v60  ;;  %v190_v24 = vadd.f32 %v174_v17, %v111_v61  ;;  %v191_v25 = vadd.f32 %v175_v18, %v118_v0  ;;  %v192_v26 = vadd.f32 %v176_v19, %v125_v3  ;;  %503 = vmatpush3.bf16.msra.mxu0 %v535_v56 }
  0xd7   :  { %v193_v28 = vadd.f32 %v177_v20, %v132_v4  ;;  %v194_v31 = vadd.f32 %v178_v21, %v139_v6  ;;  %v195_v32 = vadd.f32 %v179_v22, %v146_v10  ;;  %504 = vmatprep.subr.bf16.mxu0 %v668_v46  ;;  %v537_v22 = vld [vmem:[#allocation9] sm:$0xff]  }
  0xd8   :  { %v204_v29 = vrot.slane %v189_v23, 7  ;;  %v206_v30 = vrot.slane %v190_v24, 6  ;;  %v208_v34 = vrot.slane %v191_v25, 5  ;;  %v210_v36 = vrot.slane %v192_v26, 4  ;;  %511 = vmatpush3.bf16.msra.mxu1 %v537_v22 }
  0xd9   :  { %v212_v38 = vrot.slane %v193_v28, 3  ;;  %v214_v40 = vrot.slane %v194_v31, 2  ;;  %v216_v42 = vrot.slane %v195_v32, 1  ;;  %512 = vmatprep.subr.bf16.mxu1 %v668_v46 }
  0xda   :  { %v205_v33 = vsel %vm155_vm0, %v204_v29, %v188_v27  ;;  %505 = vmatpush3.bf16.msra.mxu0 %v536_v63 }
  0xdb   :  { %v207_v35 = vsel %vm157_vm1, %v206_v30, %v205_v33 }
  0xdc   :  { %v209_v37 = vsel %vm159_vm2, %v208_v34, %v207_v35 }
  0xdd   :  { %v211_v39 = vsel %vm161_vm3, %v210_v36, %v209_v37 }
  0xde   :  { %v213_v41 = vsel %vm163_vm4, %v212_v38, %v211_v39 }
  0xdf   :  { %v215_v43 = vsel %vm165_vm5, %v214_v40, %v213_v41 }
  0xe0   :  { %v217_v44 = vsel %vm167_vm6, %v216_v42, %v215_v43 }
  0xe1   :  { %219 = vrot.lane.b32.xlu0 %v217_v44, %s667_s3 }
 0x153   :  { %v220_v51 = vpop.permute.xlu0 %219 }
 0x154   :  { %v222_v52 = vrot.slane %v220_v51, 1  ;;  %v223_v53 = vrot.slane %v220_v51, 2  ;;  %v224_v54 = vrot.slane %v220_v51, 3  ;;  %v225_v55 = vrot.slane %v220_v51, 4 }
 0x155   :  { %v226_v57 = vrot.slane %v220_v51, 5  ;;  %v227_v58 = vrot.slane %v220_v51, 6  ;;  %v228_v59 = vrot.slane %v220_v51, 7  ;;  %v237_v1 = vadd.f32 %v220_v51, %v188_v27  ;;  %v277_v27 = vld [vmem:[%s807_s4] sm:$0x3]  ;;  %s671_s4 = smov [#allocation11]  }
 0x156   :  { %v238_v60 = vadd.f32 %v222_v52, %v189_v23  ;;  %v239_v61 = vadd.f32 %v223_v53, %v190_v24  ;;  %v240_v62 = vadd.f32 %v224_v54, %v191_v25  ;;  %v241_v0 = vadd.f32 %v225_v55, %v192_v26  ;;  %v538_v23 = vld [vmem:[#allocation9 + $0x8] sm:$0xff]   ;;  %s463_s19 = sshll.u32 %s671_s4, 4  ;;  %s464_s19 = int_to_ptr.vmem [resolvable:$true] %s463_s19 }
 0x157   :  { %v242_v2 = vadd.f32 %v226_v57, %v193_v28  ;;  %v243_v5 = vadd.f32 %v227_v58, %v194_v31  ;;  %v244_v6 = vadd.f32 %v228_v59, %v195_v32  ;;  %513 = vmatpush3.bf16.msra.mxu1 %v538_v23  ;;  %v290_v24 = vlaneseq  ;;  %s629_s20 = scalar_lea.vmem %s464_s19, 128  ;;  %p634_p5 = scmp.lt.s32.totalorder %s464_s19, %s464_s19 }
 0x158   :  { %v256_v3 = vrot.slane %v238_v60, 7  ;;  %v258_v4 = vrot.slane %v239_v61, 6  ;;  %v260_v8 = vrot.slane %v240_v62, 5  ;;  %v262_v10 = vrot.slane %v241_v0, 4  ;;  %p630_p4 = scmp.ne.s32.totalorder %s464_s19, %s629_s20  ;;  %p635_p6 = scmp.lt.s32.totalorder %s629_s20, %s629_s20 }
 0x159   :  { %v264_v12 = vrot.slane %v242_v2, 3  ;;  %v266_v14 = vrot.slane %v243_v5, 2  ;;  %v268_v16 = vrot.slane %v244_v6, 1  ;;  %v291_v25 = vshrl.u32 %v290_v24, 7 }
 0x15a   :  { %v257_v7 = vsel %vm155_vm0, %v256_v3, %v237_v1  ;;  %p636_p7 = por %p635_p6, %p634_p5 }
 0x15b   :  { %v259_v9 = vsel %vm157_vm1, %v258_v4, %v257_v7  ;;  %v292_v26 = vsub.s32 0, %v291_v25  ;;  %v453_v41 = vsub.s32 1, %v291_v25 }
 0x15c   :  { %v261_v11 = vsel %vm159_vm2, %v260_v8, %v259_v9  ;;  %p637_p8 = pnand %p636_p7, %p630_p4 }
 0x15d   :  { %v263_v13 = vsel %vm161_vm3, %v262_v10, %v261_v11  ;;  %v293_v28 = vrot.slane %v277_v27, %v292_v26  ;;  %v454_v44 = vrot.slane %v277_v27, %v453_v41 }
 0x15e   :  { %v265_v15 = vsel %vm163_vm4, %v264_v12, %v263_v13 }
 0x15f   :  { %v267_v17 = vsel %vm165_vm5, %v266_v14, %v265_v15 }
 0x160   :  { %v269_v18 = vsel %vm167_vm6, %v268_v16, %v267_v17 }
 0x161   :  { %270 = vrot.lane.b32.xlu1 %v269_v18, %s664_s0 }
 0x1d3   :  { %v271_v19 = vpop.permute.xlu1 %270 }
 0x1d4   :  { %274 = vst.msk [vmem:[#allocation2] sm:$0xff] %vm273_vm9, %v271_v19 }
 0x1db   :  { %v275_v20 = vld [vmem:[#allocation2] sm:$0xff] }
 0x1dc   :  { %v276_v21 = vpack.c.bf16 %v275_v20, %v275_v20 }
 0x1de   :  { %507 = vmatmul.mubr.msk.bf16.vlgmr.msra.gmra.mrb[0].mxu0 %vm330_vm10, %v276_v21 }
 0x2b1   :  { %v368_v29 = vpop.f32.mrb[0].mxu0 }
 0x2b2   :  { %v369_v30 = vadd.f32 %v368_v29, %v293_v28  ;;  %v508_v31 = vpop.f32.mrb[1].mxu0 }
 0x2b3   :  { %v371_v32 = vpop.f32.mrb[2].mxu0 }
 0x2b4   :  { %439 = vrot.lane.b32.xlu0 %v369_v30, %s664_s0  ;;  %v509_v33 = vpop.f32.mrb[3].mxu0  ;;  %v374_v34 = vpack.c.bf16 %v369_v30, %v369_v30 }
 0x2b6   :  { %380 = vrot.lane.b32.xlu1 %v374_v34, %s670_s18 }
 0x326   :  { %v440_v35 = vpop.permute.xlu0 %439 }
 0x327   :  { %v442_v36 = vmul.f32 %v440_v35, %v369_v30 }
 0x328   :  { %v381_v37 = vpop.permute.xlu1 %380 }
 0x329   :  { %v443_v38 = vmul.f32 1.442695, %v442_v36  ;;  %515 = vmatmul.mubr.msk.bf16.vlgmr.msra.gmra.mrb[0].mxu1 %vm394_vm11, %v381_v37 }
 0x32b   :  { %539 = vpow2.f32 %v443_v38 }
 0x335   :  { %v540_v39 = vpop.eup %539 }
 0x336   :  { %v445_v40 = vsel %vm394_vm11, %v540_v39, 0.0 }
 0x337   :  { %446 = vadd.xlane.f32.xlu1 %v445_v40 }
 0x3c4   :  { %v447_v42 = vpop.xlane.xlu1 %446 }
 0x3c5   :  { %v449_v43 = vmul.f32 0.03125, %v447_v42 }
 0x3fc   :  { %v432_v45 = vpop.f32.mrb[0].mxu1 }
 0x3fd   :  { %v450_v46 = vmul.f32 %v449_v43, %v432_v45  ;;  %v516_v47 = vpop.f32.mrb[1].mxu1 }
 0x3fe   :  { %v435_v48 = vpop.f32.mrb[2].mxu1 }
 0x3ff   :  { %v455_v49 = vadd.f32 %v454_v44, %v450_v46  ;;  %v517_v50 = vpop.f32.mrb[3].mxu1 }
 0x401   :  { %456 = vst [vmem:[#allocation11] sm:$0xff] %v455_v49 }
 0x402   :  { %640 = shalt.err (!%p637_p8)
}
 0x403   :  { %s641_s23 = scalar_lea.hbm %s808_s5, 128 }
 0x404   :  { %p642_p9 = scmp.ne.s32.totalorder %s808_s5, %s641_s23  ;;  %p645_p10 = scmp.lt.u32.totalorder %s641_s23, %s808_s5 }
 0x406   :  { %p647_p11 = pnand %p645_p10, %p642_p9 }
 0x408   :  { %650 = shalt.err (!%p647_p11)
}
 0x409   :  { %466 = dma.vmem_to_hbm [thread:$0]  %s464_s19, 128, %s808_s5, [#allocation5]  }
 0x40a   :  { %657 = dma.done.wait [#allocation5], 128  }
 0x40b   :  { %658 = vsyncadd [#allocation5], 4294967168 }
 0x40c   :  { %470 = vsyncpa [#allocation4], 1 }
 0x40d   :  { %471 = vsyncpa [#allocation7], 1 }
 0x40e   :  { %472 = vsyncpa [#allocation10], 1 }
 0x40f   :  { %473 = vsyncpa [#allocation5], 1 }

</bundles_post_ra>
